<compile_context>
chip_gen: v5e
topology: v5e:2x2
jax: 0.10.0
libtpu: 0.0.40
codegen_flags: <defaults>
</compile_context>

<pallas_src>
import functools

import jax
import jax.numpy as jnp
from jax.experimental import pallas as pl
from jax.experimental.pallas import tpu as pltpu

LANES = 128
MAX_ROW_TILE = 1024  # 1024 x 128 x 4B = 512 KiB per f32 input block


def _dice_partials_kernel(x_ref, t_ref, out_ref, *, n_valid, row_tile, masked):
    """Per-block partial sums: out[0] = sum(sigmoid(x)*t), out[1] = sum(sigmoid(x)),
    out[2] = sum(t), each folded to a (8, 128) lane-shaped partial (VPU-only)."""
    x = x_ref[...].astype(jnp.float32)
    t = t_ref[...].astype(jnp.float32)

    s = jax.nn.sigmoid(x)  # EUP work; DMA hides behind it for large blocks

    if masked:
        # Mask both the alignment pad and any out-of-bounds rows of the last
        # (possibly partial) block.  Mask AFTER the sigmoid so padded slots
        # contribute exactly zero to every sum.
        base_row = pl.program_id(0) * row_tile
        row = jax.lax.broadcasted_iota(jnp.int32, s.shape, 0) + base_row
        lane = jax.lax.broadcasted_iota(jnp.int32, s.shape, 1)
        valid = row * LANES + lane < n_valid
        s = jnp.where(valid, s, 0.0)
        t = jnp.where(valid, t, 0.0)

    g = row_tile // 8
    # Reshape splits the major axis on vreg boundaries -> free; the axis-0 sum
    # is an elementwise add across vregs (VPU), not a cross-lane reduction.
    out_ref[0, 0] = (s * t).reshape(g, 8, LANES).sum(axis=0)   # intersection
    out_ref[0, 1] = s.reshape(g, 8, LANES).sum(axis=0)         # inputs.sum()
    out_ref[0, 2] = t.reshape(g, 8, LANES).sum(axis=0)         # targets.sum()


def _sublane_granule(dtype):
    # f32 -> 8, bf16/f16 -> 16, int8/fp8 -> 32
    return max(8, 32 // jnp.dtype(dtype).itemsize)


def dice_loss(inputs, targets, smooth=1.0, max_row_tile=MAX_ROW_TILE):
    """Pallas implementation of DiceLoss.forward(inputs, targets, smooth)."""
    x = inputs.reshape(-1)
    t = targets.reshape(-1)
    n = x.shape[0]

    sub = max(_sublane_granule(x.dtype), _sublane_granule(t.dtype))

    # Minimal alignment: round the row count up to the sublane granule so the
    # (rows, 128) view and the block shape are always legal.  Pad is at most
    # sub*128 - 1 elements and is masked out in-kernel (pad value irrelevant).
    rows = pl.cdiv(n, LANES)
    rows = pl.cdiv(rows, sub) * sub
    n_pad = rows * LANES
    if n_pad != n:
        x = jnp.pad(x, (0, n_pad - n))
        t = jnp.pad(t, (0, n_pad - n))

    row_tile = min(max_row_tile, rows)
    row_tile = (row_tile // sub) * sub          # keep dtype-legal block shape
    nb = pl.cdiv(rows, row_tile)
    masked = (n != n_pad) or (rows % row_tile != 0)

    x2 = x.reshape(rows, LANES)
    t2 = t.reshape(rows, LANES)

    partials = pl.pallas_call(
        functools.partial(
            _dice_partials_kernel,
            n_valid=n,
            row_tile=row_tile,
            masked=masked,
        ),
        out_shape=jax.ShapeDtypeStruct((nb, 3, 8, LANES), jnp.float32),
        grid=(nb,),
        in_specs=[
            pl.BlockSpec((row_tile, LANES), lambda i: (i, 0)),
            pl.BlockSpec((row_tile, LANES), lambda i: (i, 0)),
        ],
        out_specs=pl.BlockSpec((1, 3, 8, LANES), lambda i: (i, 0, 0, 0)),
        compiler_params=pltpu.CompilerParams(
            # Each block writes its own partial slot -> fully parallel grid
            # (lets v7x shard the reduction across both TensorCores).
            dimension_semantics=("parallel",),
        ),
    )(x2, t2)

    # Tiny final combine (nb * 3 * 1024 floats) + dice formula.
    sums = jnp.sum(partials, axis=(0, 2, 3))  # (3,)
    inter, xs, ts = sums[0], sums[1], sums[2]
    dice = (2.0 * inter + float(smooth)) / (xs + ts + float(smooth))
    return 1.0 - dice


def dice_loss_ref(inputs, targets, smooth=1.0):
    """Pure-JAX reference matching the PyTorch module."""
    x = jax.nn.sigmoid(inputs.astype(jnp.float32)).reshape(-1)
    t = targets.astype(jnp.float32).reshape(-1)
    inter = jnp.sum(x * t)
    dice = (2.0 * inter + smooth) / (jnp.sum(x) + jnp.sum(t) + smooth)
    return 1.0 - dice


if __name__ == "__main__":
    key = jax.random.PRNGKey(0)
    k1, k2 = jax.random.split(key)
    # NCHW, as the PyTorch module would receive (segmentation logits / masks).
    B, C, H, W = 2, 4, 16, 16
    inputs = jax.random.normal(k1, (B, C, H, W), dtype=jnp.float32)
    targets = (jax.random.uniform(k2, (B, C, H, W)) > 0.5).astype(jnp.float32)

    loss = dice_loss(inputs, targets, smooth=1.0)
    loss = jax.block_until_ready(loss)

    ref = dice_loss_ref(inputs, targets, smooth=1.0)
    assert jnp.allclose(loss, ref, atol=1e-5, rtol=1e-5), (loss, ref)

    # Also exercise a ragged (non-multiple-of-128) size to hit the mask path.
    xr = jax.random.normal(k1, (3, 5, 7, 11), dtype=jnp.float32)
    tr = (jax.random.uniform(k2, (3, 5, 7, 11)) > 0.5).astype(jnp.float32)
    lr = jax.block_until_ready(dice_loss(xr, tr, smooth=1.0))
    assert jnp.allclose(lr, dice_loss_ref(xr, tr, smooth=1.0), atol=1e-5, rtol=1e-5)

    print("KERNEL_OK")
</pallas_src>

<mosaic_0001>
module attributes {stable_mosaic.version = 11 : i64} {
  func.func @_dice_partials_kernel(%arg0: i32, %arg1: memref<16x128xf32, #tpu.memory_space<vmem>>, %arg2: memref<16x128xf32, #tpu.memory_space<vmem>>, %arg3: memref<1x3x8x128xf32, #tpu.memory_space<vmem>>) attributes {dimension_semantics = [#tpu.dimension_semantics<parallel>], iteration_bounds = array<i64: 1>, scalar_prefetch = 0 : i64, scratch_operands = 0 : i64, tpu.core_type = #tpu.core_type<tc>, window_params = [{transform_indices = @transform_0, window_bounds = array<i64: 16, 128>}, {transform_indices = @transform_1, window_bounds = array<i64: 16, 128>}, {transform_indices = @transform_2, window_bounds = array<i64: 1, 3, 8, 128>}]} {
    %c0 = arith.constant 0 : index
    %c0_0 = arith.constant 0 : index
    %0 = vector.load %arg1[%c0, %c0_0] : memref<16x128xf32, #tpu.memory_space<vmem>>, vector<16x128xf32>
    %c0_1 = arith.constant 0 : index
    %c0_2 = arith.constant 0 : index
    %1 = vector.load %arg2[%c0_1, %c0_2] : memref<16x128xf32, #tpu.memory_space<vmem>>, vector<16x128xf32>
    %2 = arith.negf %0 : vector<16x128xf32>
    %3 = math.exp %2 : vector<16x128xf32>
    %cst = arith.constant 1.000000e+00 : f32
    %4 = vector.broadcast %cst : f32 to vector<16x128xf32>
    %5 = arith.addf %4, %3 : vector<16x128xf32>
    %6 = arith.divf %4, %5 : vector<16x128xf32>
    %7 = arith.mulf %6, %1 : vector<16x128xf32>
    %8 = vector.shape_cast %7 : vector<16x128xf32> to vector<2x8x128xf32>
    %cst_3 = arith.constant dense<0.000000e+00> : vector<8x128xf32>
    %9 = vector.multi_reduction <add>, %8, %cst_3 [0] : vector<2x8x128xf32> to vector<8x128xf32>
    %c0_4 = arith.constant 0 : index
    %c0_5 = arith.constant 0 : index
    %c0_6 = arith.constant 0 : index
    %c0_7 = arith.constant 0 : index
    %10 = vector.load %arg3[%c0_4, %c0_5, %c0_6, %c0_7] : memref<1x3x8x128xf32, #tpu.memory_space<vmem>>, vector<1x1x8x128xf32>
    %11 = vector.shape_cast %10 : vector<1x1x8x128xf32> to vector<8x128xf32>
    %12 = vector.shape_cast %9 : vector<8x128xf32> to vector<1x1x8x128xf32>
    tpu.vector_store %arg3[%c0_4, %c0_5, %c0_6, %c0_7], %12 {strides = array<i32>} : memref<1x3x8x128xf32, #tpu.memory_space<vmem>>, vector<1x1x8x128xf32>,
    %13 = vector.shape_cast %6 : vector<16x128xf32> to vector<2x8x128xf32>
    %cst_8 = arith.constant dense<0.000000e+00> : vector<8x128xf32>
    %14 = vector.multi_reduction <add>, %13, %cst_8 [0] : vector<2x8x128xf32> to vector<8x128xf32>
    %c0_9 = arith.constant 0 : index
    %c1 = arith.constant 1 : index
    %c0_10 = arith.constant 0 : index
    %c0_11 = arith.constant 0 : index
    %15 = vector.load %arg3[%c0_9, %c1, %c0_10, %c0_11] : memref<1x3x8x128xf32, #tpu.memory_space<vmem>>, vector<1x1x8x128xf32>
    %16 = vector.shape_cast %15 : vector<1x1x8x128xf32> to vector<8x128xf32>
    %17 = vector.shape_cast %14 : vector<8x128xf32> to vector<1x1x8x128xf32>
    tpu.vector_store %arg3[%c0_9, %c1, %c0_10, %c0_11], %17 {strides = array<i32>} : memref<1x3x8x128xf32, #tpu.memory_space<vmem>>, vector<1x1x8x128xf32>,
    %18 = vector.shape_cast %1 : vector<16x128xf32> to vector<2x8x128xf32>
    %cst_12 = arith.constant dense<0.000000e+00> : vector<8x128xf32>
    %19 = vector.multi_reduction <add>, %18, %cst_12 [0] : vector<2x8x128xf32> to vector<8x128xf32>
    %c0_13 = arith.constant 0 : index
    %c2 = arith.constant 2 : index
    %c0_14 = arith.constant 0 : index
    %c0_15 = arith.constant 0 : index
    %20 = vector.load %arg3[%c0_13, %c2, %c0_14, %c0_15] : memref<1x3x8x128xf32, #tpu.memory_space<vmem>>, vector<1x1x8x128xf32>
    %21 = vector.shape_cast %20 : vector<1x1x8x128xf32> to vector<8x128xf32>
    %22 = vector.shape_cast %19 : vector<8x128xf32> to vector<1x1x8x128xf32>
    tpu.vector_store %arg3[%c0_13, %c2, %c0_14, %c0_15], %22 {strides = array<i32>} : memref<1x3x8x128xf32, #tpu.memory_space<vmem>>, vector<1x1x8x128xf32>,
    return
  }
  func.func @transform_0(%arg0: i32) -> (i32, i32) {
    %c0_i32 = arith.constant 0 : i32
    %c0_i32_0 = arith.constant 0 : i32
    return %arg0, %c0_i32 : i32, i32
  }
  func.func @transform_1(%arg0: i32) -> (i32, i32) {
    %c0_i32 = arith.constant 0 : i32
    %c0_i32_0 = arith.constant 0 : i32
    return %arg0, %c0_i32 : i32, i32
  }
  func.func @transform_2(%arg0: i32) -> (i32, i32, i32, i32) {
    %c0_i32 = arith.constant 0 : i32
    %c0_i32_0 = arith.constant 0 : i32
    %c0_i32_1 = arith.constant 0 : i32
    %c0_i32_2 = arith.constant 0 : i32
    return %arg0, %c0_i32, %c0_i32_0, %c0_i32_1 : i32, i32, i32, i32
  }
}

</mosaic_0001>

<bundles_post_ra>
// kernel: tpu_custom_call.1
= control target key start
LH: loop header
LB: loop body
LE: loop exit
PB: predicated region body
PF: predicated region fallthrough
CT: control target
= control target key end

     0   :  { %7 = vsyncpa [#allocation3], 0  ;;  %s247_s0 = inlined_call_operand.hbm [shape: f32[16,128], index: 0, kind: input, shape index: {}]   ;;  %s248_s1 = inlined_call_operand.hbm [shape: f32[16,128], index: 1, kind: input, shape index: {}]   ;;  %s249_s2 = inlined_call_operand.hbm [shape: f32[1,3,8,128], index: 2, kind: output, shape index: {}]  }
   0x1   :  { %8 = vsyncpa [#allocation6], 0 }
   0x2   :  { %9 = vsyncpa [#allocation4], 0  ;;  %s14_s11 = sshll.u32 %s247_s0, 4  ;;  %s209_s12 = smov [#allocation2]   ;;  %s15_s11 = int_to_ptr.hbm [resolvable:$true] %s14_s11 }
   0x3   :  { %s16_s13 = sshll.u32 %s209_s12, 4  ;;  %s27_s16 = sshll.u32 %s248_s1, 4  ;;  %s17_s13 = int_to_ptr.vmem [resolvable:$true] %s16_s13  ;;  %s28_s16 = int_to_ptr.hbm [resolvable:$true] %s27_s16 }
   0x4   :  { %s210_s17 = smov 128   ;;  %s211_s18 = smov 8  }
   0x5   :  { %22 = dma.hbm_to_vmem [thread:$0]  %s15_s11, 256, %s17_s13, [#allocation3], %s210_s17, %s210_s17, %s211_s18  }
   0x6   :  { %s212_s19 = smov [#allocation5]  }
   0x7   :  { %s29_s20 = sshll.u32 %s212_s19, 4  ;;  %s30_s20 = int_to_ptr.vmem [resolvable:$true] %s29_s20 }
   0x8   :  { %35 = dma.hbm_to_vmem [thread:$0]  %s28_s16, 256, %s30_s20, [#allocation6], %s210_s17, %s210_s17, %s211_s18  }
   0x9   :  { %203 = dma.done.wait [#allocation3], 256  }
   0xa   :  { %204 = vsyncadd [#allocation3], 4294967040 }
   0xb   :  { %205 = dma.done.wait [#allocation6], 256  }
   0xc   :  { %206 = vsyncadd [#allocation6], 4294967040  ;;  %v44_v0 = vld [vmem:[#allocation2] sm:$0xff]  ;;  %v45_v1 = vld [vmem:[#allocation2 + $0x8] sm:$0xff]  ;;  %s213_s0 = smov [#allocation7]   ;;  %s102_s23 = sshll.u32 %s249_s2, 4  ;;  %s103_s23 = int_to_ptr.hbm [resolvable:$true] %s102_s23 }
   0xd   :  { %v46_v2 = vld [vmem:[#allocation5] sm:$0xff]  ;;  %v47_v3 = vld [vmem:[#allocation5 + $0x8] sm:$0xff]  ;;  %v116_v4 = vmul.f32 -1.442695, %v44_v0  ;;  %v117_v5 = vmul.f32 -1.442695, %v45_v1 }
   0xe   :  { %v93_v6 = vadd.f32 %v47_v3, %v46_v2  ;;  %s100_s1 = sshll.u32 %s213_s0, 4  ;;  %s101_s1 = int_to_ptr.vmem [resolvable:$true] %s100_s1 }
   0xf   :  { %123 = vpow2.f32 %v116_v4 }
  0x10   :  { %125 = vpow2.f32 %v117_v5  ;;  %95 = vst [vmem:[#allocation7 + $0x10] sm:$0xff] %v93_v6 }
  0x15   :  { %v124_v7 = vpop.eup %123 }
  0x16   :  { %v126_v8 = vpop.eup %125  ;;  %v54_v9 = vadd.f32 1.0, %v124_v7 }
  0x17   :  { %v55_v10 = vadd.f32 1.0, %v126_v8 }
  0x18   :  { %127 = vrcp.f32 %v54_v9  ;;  %vm61_vm0 = vweird.f32 %v54_v9  ;;  %v67_v14 = vand.u32 2147483648, %v54_v9  ;;  %v65_v17 = vand.u32 2147483647, %v54_v9 }
  0x19   :  { %129 = vrcp.f32 %v55_v10  ;;  %v82_v18 = vand.u32 2147483648, %v55_v10  ;;  %vm76_vm2 = vweird.f32 %v55_v10  ;;  %v80_v20 = vand.u32 2147483647, %v55_v10 }
  0x1a   :  { %v68_v22 = vor.u32 1.1754944e-38, %v67_v14  ;;  %vm66_vm5 = vcmp.eq.f32.partialorder %v65_v17, 8.507059e+37 }
  0x1b   :  { %v83_v25 = vor.u32 1.1754944e-38, %v82_v18  ;;  %vm81_vm7 = vcmp.eq.f32.partialorder %v80_v20, 8.507059e+37 }
  0x1e   :  { %v128_v11 = vpop.eup %127 }
  0x1f   :  { %v130_v12 = vpop.eup %129  ;;  %v57_v13 = vmul.f32 %v128_v11, %v54_v9  ;;  %vm62_vm1 = vweird.f32 %v128_v11 }
  0x20   :  { %v72_v15 = vmul.f32 %v130_v12, %v55_v10  ;;  %vm77_vm3 = vweird.f32 %v130_v12  ;;  %vm63_vm4 = vmor %vm61_vm0, %vm62_vm1 }
  0x21   :  { %v58_v16 = vsub.f32 1.0, %v57_v13  ;;  %vm78_vm6 = vmor %vm76_vm2, %vm77_vm3 }
  0x22   :  { %v73_v19 = vsub.f32 1.0, %v72_v15 }
  0x23   :  { %v59_v21 = vmul.f32 %v128_v11, %v58_v16 }
  0x24   :  { %v74_v23 = vmul.f32 %v130_v12, %v73_v19 }
  0x25   :  { %v60_v24 = vadd.f32 %v128_v11, %v59_v21 }
  0x26   :  { %v75_v26 = vadd.f32 %v130_v12, %v74_v23 }
  0x27   :  { %v64_v27 = vsel %vm63_vm4, %v128_v11, %v60_v24 }
  0x28   :  { %v69_v28 = vsel %vm66_vm5, %v68_v22, %v64_v27  ;;  %v79_v29 = vsel %vm78_vm6, %v130_v12, %v75_v26 }
  0x29   :  { %v84_v30 = vsel %vm81_vm7, %v83_v25, %v79_v29  ;;  %v86_v31 = vmul.f32 %v69_v28, %v46_v2 }
  0x2a   :  { %v87_v32 = vmul.f32 %v84_v30, %v47_v3  ;;  %v90_v33 = vadd.f32 %v84_v30, %v69_v28 }
  0x2c   :  { %v88_v34 = vadd.f32 %v87_v32, %v86_v31  ;;  %92 = vst [vmem:[#allocation7 + $0x8] sm:$0xff] %v90_v33 }
  0x2e   :  { %89 = vst [vmem:[#allocation7] sm:$0xff] %v88_v34 }
  0x2f   :  { %108 = dma.vmem_to_hbm [thread:$0]  %s101_s1, 384, %s103_s23, [#allocation4], %s210_s17, %s210_s17, %s211_s18  }
  0x30   :  { %207 = dma.done.wait [#allocation4], 384  }
  0x31   :  { %208 = vsyncadd [#allocation4], 4294966912 }
  0x32   :  { %113 = vsyncpa [#allocation3], 1 }
  0x33   :  { %114 = vsyncpa [#allocation6], 1 }
  0x34   :  { %115 = vsyncpa [#allocation4], 1 }

</bundles_post_ra>
